<compile_context>
chip_gen: v6e
topology: v6e:2x2x1
jax: 0.10.0
libtpu: 0.0.40
codegen_flags: <defaults>
</compile_context>

<pallas_src>
import jax
import jax.numpy as jnp
from jax.experimental import pallas as pl
from jax.experimental.pallas import tpu as pltpu


def _scale_tanh_kernel(w_ref, x_ref, o_ref):
    # w_ref: (1, 1) scalar weight in SMEM
    # x_ref / o_ref: (rows, cols) full-array block in VMEM
    w = w_ref[0, 0]
    o_ref[...] = jnp.tanh(x_ref[...] * w)


def _best_2d_shape(total):
    """Factor `total` as (rows, cols) with cols as large as possible but <= 128.

    For 35**3 = 42,875 this returns (343, 125): no padding needed and ~98%
    lane utilization.  Falls back to (total, 1) for pathological sizes.
    """
    for cols in range(min(total, 128), 0, -1):
        if total % cols == 0:
            return total // cols, cols
    return total, 1


@jax.jit
def conv_transpose3d_1x1_tanh(x, weight):
    """Equivalent of ConvTranspose3d(1,1,k=1,s=1,bias=False) followed by tanh.

    x:      (N, C, D, H, W) with N == C == 1, float32
    weight: (1, 1, 1, 1, 1) float32  (ConvTranspose3d weight)
    """
    n, c, d, h, w = x.shape
    assert n == 1 and c == 1, "this kernel specializes the 1->1 channel case"

    total = n * c * d * h * w                  # 42,875
    rows, cols = _best_2d_shape(total)         # (343, 125): no pad, no slice

    x2d = x.reshape(rows, cols)                # metadata-only reshape
    w_scalar = weight.reshape(1, 1).astype(jnp.float32)

    elem_bytes = jnp.dtype(x.dtype).itemsize
    cost = pl.CostEstimate(
        flops=total,                           # one multiply per element
        transcendentals=total,                 # one tanh per element
        bytes_accessed=2 * total * elem_bytes,
    )

    out2d = pl.pallas_call(
        _scale_tanh_kernel,
        out_shape=jax.ShapeDtypeStruct((rows, cols), x.dtype),
        in_specs=[
            pl.BlockSpec(memory_space=pltpu.SMEM),   # scalar weight
            pl.BlockSpec(memory_space=pltpu.VMEM),   # full-array block
        ],
        out_specs=pl.BlockSpec(memory_space=pltpu.VMEM),
        cost_estimate=cost,
    )(w_scalar, x2d)

    return out2d.reshape(n, c, d, h, w)


if __name__ == "__main__":
    key = jax.random.PRNGKey(0)
    kx, kw = jax.random.split(key)

    # Input matching the PyTorch module: torch.randn(1, 1, 35, 35, 35)
    x1 = jax.random.normal(kx, (1, 1, 35, 35, 35), dtype=jnp.float32)

    # Deterministic weight for ConvTranspose3d(1, 1, kernel_size=1, bias=False):
    # weight shape (in_ch, out_ch, kD, kH, kW) = (1, 1, 1, 1, 1)
    weight = jax.random.uniform(
        kw, (1, 1, 1, 1, 1), dtype=jnp.float32, minval=-1.0, maxval=1.0
    )

    out = conv_transpose3d_1x1_tanh(x1, weight)
    out = jax.block_until_ready(out)

    # Sanity check against plain-JAX reference.
    ref = jnp.tanh(x1 * weight.reshape(()))
    assert out.shape == (1, 1, 35, 35, 35)
    assert jnp.allclose(out, ref, atol=1e-6, rtol=1e-6)

    print("KERNEL_OK")
</pallas_src>

<mosaic_0001>
module attributes {stable_mosaic.version = 11 : i64} {
  func.func @_scale_tanh_kernel(%arg0: memref<1x1xf32, #tpu.memory_space<smem>>, %arg1: memref<343x125xf32, #tpu.memory_space<vmem>>, %arg2: memref<343x125xf32, #tpu.memory_space<vmem>>) attributes {dimension_semantics = [], scalar_prefetch = 0 : i64, scratch_operands = 0 : i64, tpu.core_type = #tpu.core_type<tc>} {
    %c0 = arith.constant 0 : index
    %c0_0 = arith.constant 0 : index
    %0 = memref.load %arg0[%c0, %c0_0] : memref<1x1xf32, #tpu.memory_space<smem>>
    %c0_1 = arith.constant 0 : index
    %c0_2 = arith.constant 0 : index
    %1 = vector.load %arg1[%c0_1, %c0_2] : memref<343x125xf32, #tpu.memory_space<vmem>>, vector<343x125xf32>
    %2 = vector.broadcast %0 : f32 to vector<343x125xf32>
    %3 = arith.mulf %1, %2 : vector<343x125xf32>
    %4 = math.tanh %3 : vector<343x125xf32>
    %c0_3 = arith.constant 0 : index
    %c0_4 = arith.constant 0 : index
    %5 = vector.load %arg2[%c0_3, %c0_4] : memref<343x125xf32, #tpu.memory_space<vmem>>, vector<343x125xf32>
    tpu.vector_store %arg2[%c0_3, %c0_4], %4 {strides = array<i32>} : memref<343x125xf32, #tpu.memory_space<vmem>>, vector<343x125xf32>,
    return
  }
}

</mosaic_0001>

<bundles_post_ra>
// kernel: conv_transpose3d_1x1_tanh.1
= control target key start
LH: loop header
LB: loop body
LE: loop exit
PB: predicated region body
PF: predicated region fallthrough
CT: control target
= control target key end

     0   :  { %vm143_vm0 = vcmask 1022976   ;;  %vm186_vm1 = vcmask 1021952   ;;  %s641_s0 = inlined_call_operand.<no memory space> [shape: f32[1,1], index: 0, kind: input, shape index: {}]   ;;  %s642_s1 = inlined_call_operand.vmem [shape: f32[343,125], index: 1, kind: input, shape index: {}]   ;;  %s643_s2 = inlined_call_operand.vmem [shape: f32[343,125], index: 2, kind: output, shape index: {}]  }
   0x1   :  { %v13_v0 = vld [vmem:[%s642_s1] sm:$0xff]  ;;  %v299_v1 = vstv %s641_s0  ;;  %v14_v2 = vld [vmem:[%s642_s1 + $0x8] sm:$0xff]  ;;  %v15_v3 = vld [vmem:[%s642_s1 + $0x10] sm:$0xff] }
   0x2   :  { %v57_v4 = vmul.f32 %v299_v1, %v13_v0  ;;  %v58_v5 = vmul.f32 %v299_v1, %v14_v2  ;;  %v59_v6 = vmul.f32 %v299_v1, %v15_v3  ;;  %v16_v7 = vld [vmem:[%s642_s1 + $0x18] sm:$0xff]  ;;  %v17_v8 = vld [vmem:[%s642_s1 + $0x20] sm:$0xff]  ;;  %v18_v9 = vld [vmem:[%s642_s1 + $0x28] sm:$0xff] }
   0x3   :  { %v60_v10 = vmul.f32 %v299_v1, %v16_v7  ;;  %v19_v11 = vld [vmem:[%s642_s1 + $0x30] sm:$0xff]  ;;  %v61_v12 = vmul.f32 %v299_v1, %v17_v8  ;;  %v20_v13 = vld [vmem:[%s642_s1 + $0x38] sm:$0xff]  ;;  %v62_v14 = vmul.f32 %v299_v1, %v18_v9  ;;  %v21_v15 = vld [vmem:[%s642_s1 + $0x40] sm:$0xff] }
   0x4   :  { %192 = vtanh.f32 %v57_v4  ;;  %v63_v16 = vmul.f32 %v299_v1, %v19_v11  ;;  %v22_v17 = vld [vmem:[%s642_s1 + $0x48] sm:$0xff]  ;;  %v64_v18 = vmul.f32 %v299_v1, %v20_v13  ;;  %v23_v19 = vld [vmem:[%s642_s1 + $0x50] sm:$0xff]  ;;  %v65_v20 = vmul.f32 %v299_v1, %v21_v15  ;;  %v24_v21 = vld [vmem:[%s642_s1 + $0x58] sm:$0xff] }
   0x5   :  { %194 = vtanh.f32 %v58_v5  ;;  %v66_v22 = vmul.f32 %v299_v1, %v22_v17  ;;  %v25_v23 = vld [vmem:[%s642_s1 + $0x60] sm:$0xff]  ;;  %v67_v24 = vmul.f32 %v299_v1, %v23_v19  ;;  %v26_v25 = vld [vmem:[%s642_s1 + $0x68] sm:$0xff]  ;;  %v68_v26 = vmul.f32 %v299_v1, %v24_v21  ;;  %v27_v27 = vld [vmem:[%s642_s1 + $0x70] sm:$0xff] }
   0x6   :  { %196 = vtanh.f32 %v59_v6  ;;  %v69_v28 = vmul.f32 %v299_v1, %v25_v23  ;;  %v28_v29 = vld [vmem:[%s642_s1 + $0x78] sm:$0xff]  ;;  %v70_v30 = vmul.f32 %v299_v1, %v26_v25  ;;  %v29_v31 = vld [vmem:[%s642_s1 + $0x80] sm:$0xff]  ;;  %v71_v32 = vmul.f32 %v299_v1, %v27_v27  ;;  %v30_v33 = vld [vmem:[%s642_s1 + $0x88] sm:$0xff] }
   0x7   :  { %198 = vtanh.f32 %v60_v10  ;;  %v72_v34 = vmul.f32 %v299_v1, %v28_v29  ;;  %v31_v35 = vld [vmem:[%s642_s1 + $0x90] sm:$0xff]  ;;  %v73_v36 = vmul.f32 %v299_v1, %v29_v31  ;;  %v32_v37 = vld [vmem:[%s642_s1 + $0x98] sm:$0xff]  ;;  %v74_v39 = vmul.f32 %v299_v1, %v30_v33  ;;  %v33_v40 = vld [vmem:[%s642_s1 + $0xa0] sm:$0xff] }
   0x8   :  { %200 = vtanh.f32 %v61_v12  ;;  %v75_v42 = vmul.f32 %v299_v1, %v31_v35  ;;  %v34_v43 = vld [vmem:[%s642_s1 + $0xa8] sm:$0xff]  ;;  %v76_v45 = vmul.f32 %v299_v1, %v32_v37  ;;  %v35_v46 = vld [vmem:[%s642_s1 + $0xb0] sm:$0xff]  ;;  %v77_v48 = vmul.f32 %v299_v1, %v33_v40  ;;  %v36_v49 = vld [vmem:[%s642_s1 + $0xb8] sm:$0xff] }
   0x9   :  { %202 = vtanh.f32 %v62_v14  ;;  %v78_v51 = vmul.f32 %v299_v1, %v34_v43  ;;  %v37_v52 = vld [vmem:[%s642_s1 + $0xc0] sm:$0xff]  ;;  %v79_v54 = vmul.f32 %v299_v1, %v35_v46  ;;  %v38_v55 = vld [vmem:[%s642_s1 + $0xc8] sm:$0xff]  ;;  %v80_v57 = vmul.f32 %v299_v1, %v36_v49  ;;  %v39_v58 = vld [vmem:[%s642_s1 + $0xd0] sm:$0xff] }
   0xa   :  { %204 = vtanh.f32 %v63_v16  ;;  %v81_v60 = vmul.f32 %v299_v1, %v37_v52  ;;  %v40_v61 = vld [vmem:[%s642_s1 + $0xd8] sm:$0xff]  ;;  %v82_v63 = vmul.f32 %v299_v1, %v38_v55  ;;  %v41_v0 = vld [vmem:[%s642_s1 + $0xe0] sm:$0xff]  ;;  %v83_v3 = vmul.f32 %v299_v1, %v39_v58  ;;  %v42_v4 = vld [vmem:[%s642_s1 + $0xe8] sm:$0xff] }
   0xb   :  { %206 = vtanh.f32 %v64_v18  ;;  %v84_v6 = vmul.f32 %v299_v1, %v40_v61  ;;  %v43_v7 = vld [vmem:[%s642_s1 + $0xf0] sm:$0xff]  ;;  %v85_v9 = vmul.f32 %v299_v1, %v41_v0  ;;  %v44_v10 = vld [vmem:[%s642_s1 + $0xf8] sm:$0xff]  ;;  %v86_v12 = vmul.f32 %v299_v1, %v42_v4  ;;  %v45_v13 = vld [vmem:[%s642_s1 + $0x100] sm:$0xff] }
   0xc   :  { %208 = vtanh.f32 %v65_v20  ;;  %v87_v15 = vmul.f32 %v299_v1, %v43_v7  ;;  %v46_v16 = vld [vmem:[%s642_s1 + $0x108] sm:$0xff]  ;;  %v88_v18 = vmul.f32 %v299_v1, %v44_v10  ;;  %v47_v19 = vld [vmem:[%s642_s1 + $0x110] sm:$0xff]  ;;  %v89_v21 = vmul.f32 %v299_v1, %v45_v13  ;;  %v49_v25 = vld [vmem:[%s642_s1 + $0x120] sm:$0xff] }
   0xd   :  { %210 = vtanh.f32 %v66_v22  ;;  %v48_v22 = vld [vmem:[%s642_s1 + $0x118] sm:$0xff]  ;;  %v91_v27 = vmul.f32 %v299_v1, %v47_v19  ;;  %v51_v31 = vld [vmem:[%s642_s1 + $0x130] sm:$0xff]  ;;  %v93_v33 = vmul.f32 %v299_v1, %v49_v25  ;;  %v53_v37 = vld [vmem:[%s642_s1 + $0x140] sm:$0xff] }
   0xe   :  { %212 = vtanh.f32 %v67_v24  ;;  %v90_v24 = vmul.f32 %v299_v1, %v46_v16  ;;  %v54_v40 = vld [vmem:[%s642_s1 + $0x148] sm:$0xff]  ;;  %v55_v43 = vld [vmem:[%s642_s1 + $0x150] sm:$0x7f] }
   0xf   :  { %214 = vtanh.f32 %v68_v26  ;;  %v99_v49 = vmul.f32 %v299_v1, %v55_v43 }
  0x10   :  { %216 = vtanh.f32 %v69_v28  ;;  %v50_v28 = vld [vmem:[%s642_s1 + $0x128] sm:$0xff] }
  0x11   :  { %v193_v38 = vpop.eup %192  ;;  %218 = vtanh.f32 %v70_v30  ;;  %v92_v30 = vmul.f32 %v299_v1, %v48_v22 }
  0x12   :  { %v195_v41 = vpop.eup %194  ;;  %144 = vst.msk [vmem:[%s643_s2] sm:$0xff] %vm143_vm0, %v193_v38  ;;  %220 = vtanh.f32 %v71_v32 }
  0x13   :  { %v197_v44 = vpop.eup %196  ;;  %145 = vst.msk [vmem:[%s643_s2 + $0x8] sm:$0xff] %vm143_vm0, %v195_v41  ;;  %222 = vtanh.f32 %v72_v34  ;;  %v52_v34 = vld [vmem:[%s642_s1 + $0x138] sm:$0xff] }
  0x14   :  { %v199_v47 = vpop.eup %198  ;;  %146 = vst.msk [vmem:[%s643_s2 + $0x10] sm:$0xff] %vm143_vm0, %v197_v44  ;;  %224 = vtanh.f32 %v73_v36  ;;  %v94_v36 = vmul.f32 %v299_v1, %v50_v28 }
  0x15   :  { %v201_v50 = vpop.eup %200  ;;  %147 = vst.msk [vmem:[%s643_s2 + $0x18] sm:$0xff] %vm143_vm0, %v199_v47  ;;  %226 = vtanh.f32 %v74_v39  ;;  %v95_v39 = vmul.f32 %v299_v1, %v51_v31  ;;  %v98_v47 = vmul.f32 %v299_v1, %v54_v40 }
  0x16   :  { %v203_v53 = vpop.eup %202  ;;  %148 = vst.msk [vmem:[%s643_s2 + $0x20] sm:$0xff] %vm143_vm0, %v201_v50  ;;  %228 = vtanh.f32 %v75_v42  ;;  %v96_v42 = vmul.f32 %v299_v1, %v52_v34 }
  0x17   :  { %v205_v56 = vpop.eup %204  ;;  %149 = vst.msk [vmem:[%s643_s2 + $0x28] sm:$0xff] %vm143_vm0, %v203_v53  ;;  %230 = vtanh.f32 %v76_v45  ;;  %v97_v45 = vmul.f32 %v299_v1, %v53_v37 }
  0x18   :  { %v207_v59 = vpop.eup %206  ;;  %150 = vst.msk [vmem:[%s643_s2 + $0x30] sm:$0xff] %vm143_vm0, %v205_v56  ;;  %232 = vtanh.f32 %v77_v48 }
  0x19   :  { %v209_v62 = vpop.eup %208  ;;  %151 = vst.msk [vmem:[%s643_s2 + $0x38] sm:$0xff] %vm143_vm0, %v207_v59  ;;  %234 = vtanh.f32 %v78_v51 }
  0x1a   :  { %v211_v2 = vpop.eup %210  ;;  %152 = vst.msk [vmem:[%s643_s2 + $0x40] sm:$0xff] %vm143_vm0, %v209_v62  ;;  %236 = vtanh.f32 %v79_v54 }
  0x1b   :  { %v213_v5 = vpop.eup %212  ;;  %153 = vst.msk [vmem:[%s643_s2 + $0x48] sm:$0xff] %vm143_vm0, %v211_v2  ;;  %238 = vtanh.f32 %v80_v57 }
  0x1c   :  { %v215_v8 = vpop.eup %214  ;;  %154 = vst.msk [vmem:[%s643_s2 + $0x50] sm:$0xff] %vm143_vm0, %v213_v5  ;;  %240 = vtanh.f32 %v81_v60 }
  0x1d   :  { %v217_v11 = vpop.eup %216  ;;  %155 = vst.msk [vmem:[%s643_s2 + $0x58] sm:$0xff] %vm143_vm0, %v215_v8  ;;  %242 = vtanh.f32 %v82_v63 }
  0x1e   :  { %v219_v14 = vpop.eup %218  ;;  %156 = vst.msk [vmem:[%s643_s2 + $0x60] sm:$0xff] %vm143_vm0, %v217_v11  ;;  %244 = vtanh.f32 %v83_v3 }
  0x1f   :  { %v221_v17 = vpop.eup %220  ;;  %157 = vst.msk [vmem:[%s643_s2 + $0x68] sm:$0xff] %vm143_vm0, %v219_v14  ;;  %246 = vtanh.f32 %v84_v6 }
  0x20   :  { %v223_v20 = vpop.eup %222  ;;  %158 = vst.msk [vmem:[%s643_s2 + $0x70] sm:$0xff] %vm143_vm0, %v221_v17  ;;  %248 = vtanh.f32 %v85_v9 }
  0x21   :  { %v225_v23 = vpop.eup %224  ;;  %159 = vst.msk [vmem:[%s643_s2 + $0x78] sm:$0xff] %vm143_vm0, %v223_v20  ;;  %250 = vtanh.f32 %v86_v12 }
  0x22   :  { %v227_v26 = vpop.eup %226  ;;  %160 = vst.msk [vmem:[%s643_s2 + $0x80] sm:$0xff] %vm143_vm0, %v225_v23  ;;  %252 = vtanh.f32 %v87_v15 }
  0x23   :  { %v229_v29 = vpop.eup %228  ;;  %161 = vst.msk [vmem:[%s643_s2 + $0x88] sm:$0xff] %vm143_vm0, %v227_v26  ;;  %254 = vtanh.f32 %v88_v18 }
  0x24   :  { %v231_v32 = vpop.eup %230  ;;  %162 = vst.msk [vmem:[%s643_s2 + $0x90] sm:$0xff] %vm143_vm0, %v229_v29  ;;  %256 = vtanh.f32 %v89_v21 }
  0x25   :  { %v233_v35 = vpop.eup %232  ;;  %163 = vst.msk [vmem:[%s643_s2 + $0x98] sm:$0xff] %vm143_vm0, %v231_v32  ;;  %258 = vtanh.f32 %v90_v24 }
  0x26   :  { %v235_v38 = vpop.eup %234  ;;  %164 = vst.msk [vmem:[%s643_s2 + $0xa0] sm:$0xff] %vm143_vm0, %v233_v35  ;;  %260 = vtanh.f32 %v91_v27 }
  0x27   :  { %v237_v41 = vpop.eup %236  ;;  %165 = vst.msk [vmem:[%s643_s2 + $0xa8] sm:$0xff] %vm143_vm0, %v235_v38  ;;  %262 = vtanh.f32 %v92_v30 }
  0x28   :  { %v239_v44 = vpop.eup %238  ;;  %166 = vst.msk [vmem:[%s643_s2 + $0xb0] sm:$0xff] %vm143_vm0, %v237_v41  ;;  %264 = vtanh.f32 %v93_v33 }
  0x29   :  { %v241_v46 = vpop.eup %240  ;;  %167 = vst.msk [vmem:[%s643_s2 + $0xb8] sm:$0xff] %vm143_vm0, %v239_v44  ;;  %266 = vtanh.f32 %v94_v36 }
  0x2a   :  { %v243_v48 = vpop.eup %242  ;;  %168 = vst.msk [vmem:[%s643_s2 + $0xc0] sm:$0xff] %vm143_vm0, %v241_v46  ;;  %268 = vtanh.f32 %v95_v39 }
  0x2b   :  { %v245_v50 = vpop.eup %244  ;;  %169 = vst.msk [vmem:[%s643_s2 + $0xc8] sm:$0xff] %vm143_vm0, %v243_v48  ;;  %270 = vtanh.f32 %v96_v42 }
  0x2c   :  { %v247_v51 = vpop.eup %246  ;;  %170 = vst.msk [vmem:[%s643_s2 + $0xd0] sm:$0xff] %vm143_vm0, %v245_v50  ;;  %272 = vtanh.f32 %v97_v45 }
  0x2d   :  { %v249_v52 = vpop.eup %248  ;;  %171 = vst.msk [vmem:[%s643_s2 + $0xd8] sm:$0xff] %vm143_vm0, %v247_v51  ;;  %274 = vtanh.f32 %v98_v47 }
  0x2e   :  { %v251_v1 = vpop.eup %250  ;;  %172 = vst.msk [vmem:[%s643_s2 + $0xe0] sm:$0xff] %vm143_vm0, %v249_v52  ;;  %276 = vtanh.f32 %v99_v49 }
  0x2f   :  { %v253_v53 = vpop.eup %252  ;;  %173 = vst.msk [vmem:[%s643_s2 + $0xe8] sm:$0xff] %vm143_vm0, %v251_v1 }
  0x30   :  { %v255_v54 = vpop.eup %254  ;;  %174 = vst.msk [vmem:[%s643_s2 + $0xf0] sm:$0xff] %vm143_vm0, %v253_v53 }
  0x31   :  { %v257_v55 = vpop.eup %256  ;;  %175 = vst.msk [vmem:[%s643_s2 + $0xf8] sm:$0xff] %vm143_vm0, %v255_v54 }
  0x32   :  { %v259_v56 = vpop.eup %258  ;;  %176 = vst.msk [vmem:[%s643_s2 + $0x100] sm:$0xff] %vm143_vm0, %v257_v55 }
  0x33   :  { %v261_v57 = vpop.eup %260  ;;  %177 = vst.msk [vmem:[%s643_s2 + $0x108] sm:$0xff] %vm143_vm0, %v259_v56 }
  0x34   :  { %v263_v58 = vpop.eup %262  ;;  %178 = vst.msk [vmem:[%s643_s2 + $0x110] sm:$0xff] %vm143_vm0, %v261_v57 }
  0x35   :  { %v265_v59 = vpop.eup %264  ;;  %179 = vst.msk [vmem:[%s643_s2 + $0x118] sm:$0xff] %vm143_vm0, %v263_v58 }
  0x36   :  { %v267_v60 = vpop.eup %266  ;;  %180 = vst.msk [vmem:[%s643_s2 + $0x120] sm:$0xff] %vm143_vm0, %v265_v59 }
  0x37   :  { %v269_v61 = vpop.eup %268  ;;  %181 = vst.msk [vmem:[%s643_s2 + $0x128] sm:$0xff] %vm143_vm0, %v267_v60 }
  0x38   :  { %v271_v62 = vpop.eup %270  ;;  %182 = vst.msk [vmem:[%s643_s2 + $0x130] sm:$0xff] %vm143_vm0, %v269_v61 }
  0x39   :  { %v273_v63 = vpop.eup %272  ;;  %183 = vst.msk [vmem:[%s643_s2 + $0x138] sm:$0xff] %vm143_vm0, %v271_v62 }
  0x3a   :  { %v275_v0 = vpop.eup %274  ;;  %184 = vst.msk [vmem:[%s643_s2 + $0x140] sm:$0xff] %vm143_vm0, %v273_v63 }
  0x3b   :  { %v277_v2 = vpop.eup %276  ;;  %185 = vst.msk [vmem:[%s643_s2 + $0x148] sm:$0xff] %vm143_vm0, %v275_v0 }
  0x3c   :  { %187 = vst.msk [vmem:[%s643_s2 + $0x150] sm:$0x7f] %vm186_vm1, %v277_v2 }

</bundles_post_ra>
